<compile_context>
chip_gen: v5e
topology: v5e:2x2
jax: 0.10.0
libtpu: 0.0.40
codegen_flags: <defaults>
</compile_context>

<pallas_src>
import functools

import jax
import jax.numpy as jnp
from jax.experimental import pallas as pl
from jax.experimental.pallas import tpu as pltpu

BN_EPS = 1e-5

# Tile caps.  bf16 operand tiles of (256 x 512) are 256 KiB each, so even with
# double buffering + f32 accumulator the kernel stays far below the 32 MiB
# default-scoped VMEM on every generation (v5e/v6e: 128 MiB, v7x: 64 MiB).
_TM_MAX = 256
_TN_MAX = 256
_TK_CANDIDATES = (512, 256, 128)

_VMEM_FULL = pl.BlockSpec(memory_space=pltpu.MemorySpace.VMEM)


def _round_up(x, m):
    return (x + m - 1) // m * m


def _pick_tk(k):
    # Prefer fewer K grid steps as long as zero-padding waste stays <= 25%.
    for c in _TK_CANDIDATES:
        kp = _round_up(k, c)
        if (kp - k) * 4 <= kp:
            return c
    return _TK_CANDIDATES[-1]


def _pad2(x, rows, cols):
    pr, pc = rows - x.shape[0], cols - x.shape[1]
    if pr == 0 and pc == 0:
        return x
    return jnp.pad(x, ((0, pr), (0, pc)))


# ----------------------------- Pallas kernels ------------------------------

def _gemm_bn_act_kernel(*refs, apply_relu, has_res):
    """Tiled GEMM with fused BN scale/bias (+ residual) (+ ReLU) epilogue.

    grid = (M/tm, N/tn, K/tk); K is the innermost (reduction) axis.
    """
    if has_res:
        a_ref, b_ref, scale_ref, bias_ref, res_ref, o_ref, acc_ref = refs
    else:
        a_ref, b_ref, scale_ref, bias_ref, o_ref, acc_ref = refs
        res_ref = None
    k = pl.program_id(2)

    @pl.when(k == 0)
    def _():
        acc_ref[...] = jnp.zeros_like(acc_ref)

    acc_ref[...] += jnp.dot(a_ref[...], b_ref[...],
                            preferred_element_type=jnp.float32)

    @pl.when(k == pl.num_programs(2) - 1)
    def _():
        # Epilogue entirely in f32 vregs; cast only at the store (v5e-friendly).
        y = acc_ref[...] * scale_ref[...] + bias_ref[...]
        if has_res:
            y = y + res_ref[...].astype(jnp.float32)
        if apply_relu:
            y = jnp.maximum(y, 0.0)
        o_ref[...] = y.astype(o_ref.dtype)


def _window_max_kernel(x_ref, o_ref):
    # x: (KH*KW, tm, C) -> o: (tm, C)   (max over the window axis)
    o_ref[...] = jnp.max(x_ref[...], axis=0)


def _global_avgpool_kernel(x_ref, o_ref):
    # x: (N, H*W, C) -> o: (N, C), reduce in f32.
    o_ref[...] = jnp.mean(x_ref[...].astype(jnp.float32), axis=1)


# --------------------------- fused GEMM wrapper -----------------------------

def fused_gemm(a, b, scale, bias, residual=None, relu=False,
               out_dtype=jnp.bfloat16):
    """(a @ b) * scale + bias (+ residual) (+ ReLU), bf16 MXU, f32 accumulate."""
    M, K = a.shape
    K2, N = b.shape
    assert K == K2

    tm = min(_TM_MAX, _round_up(M, 128))
    tn = min(_TN_MAX, _round_up(N, 128))      # lane-dense (>=128) output tiles
    tk = _pick_tk(K)
    Mp, Np, Kp = _round_up(M, tm), _round_up(N, tn), _round_up(K, tk)

    a_p = _pad2(a.astype(jnp.bfloat16), Mp, Kp)
    b_p = _pad2(b.astype(jnp.bfloat16), Kp, Np)
    scale_p = _pad2(scale.astype(jnp.float32), 1, Np)
    bias_p = _pad2(bias.astype(jnp.float32), 1, Np)

    args = [a_p, b_p, scale_p, bias_p]
    in_specs = [
        pl.BlockSpec((tm, tk), lambda i, j, k: (i, k)),
        pl.BlockSpec((tk, tn), lambda i, j, k: (k, j)),
        pl.BlockSpec((1, tn), lambda i, j, k: (0, j)),
        pl.BlockSpec((1, tn), lambda i, j, k: (0, j)),
    ]
    has_res = residual is not None
    if has_res:
        args.append(_pad2(residual.astype(jnp.bfloat16), Mp, Np))
        in_specs.append(pl.BlockSpec((tm, tn), lambda i, j, k: (i, j)))

    kernel = functools.partial(_gemm_bn_act_kernel,
                               apply_relu=relu, has_res=has_res)
    out = pl.pallas_call(
        kernel,
        out_shape=jax.ShapeDtypeStruct((Mp, Np), out_dtype),
        grid_spec=pltpu.PrefetchScalarGridSpec(
            num_scalar_prefetch=0,
            grid=(Mp // tm, Np // tn, Kp // tk),
            in_specs=in_specs,
            out_specs=pl.BlockSpec((tm, tn), lambda i, j, k: (i, j)),
            scratch_shapes=[pltpu.VMEM((tm, tn), jnp.float32)],
        ),
        compiler_params=pltpu.CompilerParams(
            dimension_semantics=("parallel", "parallel", "arbitrary")),
    )(*args)
    return out[:M, :N]


# ------------------------------ layer helpers ------------------------------

def _im2col(x, kh, kw, stride, pad):
    """x: (N,H,W,C) NHWC -> patches (N*OH*OW, kh*kw*C), plus (N, OH, OW)."""
    N, H, W, C = x.shape
    OH = (H + 2 * pad - kh) // stride + 1
    OW = (W + 2 * pad - kw) // stride + 1
    xp = jnp.pad(x, ((0, 0), (pad, pad), (pad, pad), (0, 0)))
    cols = []
    for dh in range(kh):
        for dw in range(kw):
            cols.append(xp[:, dh:dh + stride * OH:stride,
                           dw:dw + stride * OW:stride, :])
    patches = jnp.stack(cols, axis=3)                 # (N, OH, OW, kh*kw, C)
    return patches.reshape(N * OH * OW, kh * kw * C), (N, OH, OW)


def conv_bn_act(x, conv, bn, *, stride, pad, relu, residual=None):
    """Conv2d (no bias) + folded BatchNorm (+ residual) (+ ReLU), NHWC bf16.

    conv: {'w': (KH*KW*Cin, Cout) bf16 (pre-transposed), 'kh', 'kw'}.
    """
    w2d, kh, kw = conv['w'], conv['kh'], conv['kw']
    scale, bias = bn
    a, (N, OH, OW) = _im2col(x, kh, kw, stride, pad)
    OC = w2d.shape[1]
    res = residual.reshape(N * OH * OW, OC) if residual is not None else None
    out = fused_gemm(a, w2d, scale, bias, residual=res, relu=relu,
                     out_dtype=jnp.bfloat16)
    return out.reshape(N, OH, OW, OC)


def maxpool2d_3x3_s2_p1(x):
    N, H, W, C = x.shape
    OH = (H + 2 - 3) // 2 + 1
    OW = (W + 2 - 3) // 2 + 1
    # Input is post-ReLU (>= 0), so zero padding is equivalent to -inf padding.
    xp = jnp.pad(x, ((0, 0), (1, 1), (1, 1), (0, 0)))
    wins = []
    for dh in range(3):
        for dw in range(3):
            wins.append(xp[:, dh:dh + 2 * OH:2, dw:dw + 2 * OW:2, :]
                        .reshape(N * OH * OW, C))
    stacked = jnp.stack(wins, axis=0)                  # (9, M, C)
    M = N * OH * OW
    tm = min(512, _round_up(M, 8))
    Mp = _round_up(M, tm)
    stacked = jnp.pad(stacked, ((0, 0), (0, Mp - M), (0, 0)))
    out = pl.pallas_call(
        _window_max_kernel,
        out_shape=jax.ShapeDtypeStruct((Mp, C), x.dtype),
        grid_spec=pltpu.PrefetchScalarGridSpec(
            num_scalar_prefetch=0,
            grid=(Mp // tm,),
            in_specs=[pl.BlockSpec((9, tm, C), lambda i: (0, i, 0))],
            out_specs=pl.BlockSpec((tm, C), lambda i: (i, 0)),
        ),
        compiler_params=pltpu.CompilerParams(
            dimension_semantics=("parallel",)),
    )(stacked)
    return out[:M].reshape(N, OH, OW, C)


def global_avgpool(x):
    N, H, W, C = x.shape
    xr = x.reshape(N, H * W, C)
    return pl.pallas_call(
        _global_avgpool_kernel,
        out_shape=jax.ShapeDtypeStruct((N, C), jnp.float32),
        in_specs=[_VMEM_FULL],
        out_specs=_VMEM_FULL,
    )(xr)


def linear(x, w2d, b):
    """x: (N, F) f32, w2d: (F, num_classes) bf16 (pre-transposed), b: (classes,)."""
    C = w2d.shape[1]
    ones = jnp.ones((1, C), jnp.float32)
    # N (=num_classes) is padded to 128 lanes inside fused_gemm and sliced back.
    return fused_gemm(x, w2d, ones, b.reshape(1, C), residual=None, relu=False,
                      out_dtype=jnp.float32)


# --------------------------- parameter construction ------------------------

def _fold_bn(gamma, beta, mean, var):
    scale = gamma / jnp.sqrt(var + BN_EPS)
    bias = beta - mean * scale
    return (scale.reshape(1, -1).astype(jnp.float32),
            bias.reshape(1, -1).astype(jnp.float32))


def _init_conv(key, oc, ic, kh, kw):
    # kaiming_normal_(mode='fan_out', nonlinearity='relu')
    fan_out = oc * kh * kw
    std = (2.0 / fan_out) ** 0.5
    return (std * jax.random.normal(key, (oc, ic, kh, kw))).astype(jnp.float32)


def _prep_conv(w):
    """(OC, IC, KH, KW) PyTorch layout -> GEMM-ready (KH*KW*IC, OC) bf16, once."""
    oc, ic, kh, kw = w.shape
    w2d = jnp.transpose(w, (2, 3, 1, 0)).reshape(kh * kw * ic, oc)
    return {'w': w2d.astype(jnp.bfloat16), 'kh': kh, 'kw': kw}


def _init_bn(key, c):
    k1, k2, k3, k4 = jax.random.split(key, 4)
    gamma = 1.0 + 0.1 * jax.random.normal(k1, (c,))
    beta = 0.1 * jax.random.normal(k2, (c,))
    mean = 0.1 * jax.random.normal(k3, (c,))
    var = 1.0 + 0.1 * jnp.abs(jax.random.normal(k4, (c,)))
    return _fold_bn(gamma, beta, mean, var)


def make_params(key, blocks_num=(1, 1, 1, 1), num_classes=10):
    keys = iter(jax.random.split(key, 256))
    p = {}
    p['conv1'] = _prep_conv(_init_conv(next(keys), 64, 3, 7, 7))
    p['bn1'] = _init_bn(next(keys), 64)

    in_ch = 64
    layers = []
    for ch, n_blocks, first_stride in zip((64, 128, 256, 512), blocks_num,
                                          (1, 2, 2, 2)):
        blocks = []
        for bi in range(n_blocks):
            s = first_stride if bi == 0 else 1
            blk = {'stride': s}
            blk['conv1'] = _prep_conv(_init_conv(next(keys), ch, in_ch, 3, 3))
            blk['bn1'] = _init_bn(next(keys), ch)
            blk['conv2'] = _prep_conv(_init_conv(next(keys), ch, ch, 3, 3))
            blk['bn2'] = _init_bn(next(keys), ch)
            if s != 1 or in_ch != ch:                 # BasicBlock expansion=1
                blk['dconv'] = _prep_conv(_init_conv(next(keys), ch, in_ch, 1, 1))
                blk['dbn'] = _init_bn(next(keys), ch)
            blocks.append(blk)
            in_ch = ch
        layers.append(blocks)
    p['layers'] = layers

    fc_w = 0.01 * jax.random.normal(next(keys), (num_classes, 512))
    p['fc_w'] = jnp.transpose(fc_w).astype(jnp.bfloat16)   # (512, num_classes)
    p['fc_b'] = jnp.zeros((num_classes,), jnp.float32)
    return p


# -------------------------------- forward ----------------------------------

def basic_block_forward(x, blk):
    stride = blk['stride']
    if 'dconv' in blk:
        identity = conv_bn_act(x, blk['dconv'], blk['dbn'],
                               stride=stride, pad=0, relu=False)
    else:
        identity = x
    out = conv_bn_act(x, blk['conv1'], blk['bn1'],
                      stride=stride, pad=1, relu=True)
    # residual add + ReLU fused into the second conv's epilogue
    out = conv_bn_act(out, blk['conv2'], blk['bn2'],
                      stride=1, pad=1, relu=True, residual=identity)
    return out


def resnet_forward(x_nchw, p, include_top=True):
    x = jnp.transpose(x_nchw, (0, 2, 3, 1)).astype(jnp.bfloat16)  # NCHW -> NHWC
    x = conv_bn_act(x, p['conv1'], p['bn1'], stride=2, pad=3, relu=True)
    x = maxpool2d_3x3_s2_p1(x)
    for blocks in p['layers']:
        for blk in blocks:
            x = basic_block_forward(x, blk)
    if include_top:
        x = global_avgpool(x)            # AdaptiveAvgPool2d((1,1)) + flatten
        x = linear(x, p['fc_w'], p['fc_b'])
    return x


# ---------------------------------- main ------------------------------------

if __name__ == "__main__":
    key = jax.random.PRNGKey(0)
    pkey, xkey = jax.random.split(key)
    params = make_params(pkey, blocks_num=(1, 1, 1, 1), num_classes=10)

    # small test input: batch=2, 3 channels, 32x32 spatial (NCHW, like PyTorch)
    x = jax.random.normal(xkey, (2, 3, 32, 32), jnp.float32)

    out = resnet_forward(x, params)
    out = jax.block_until_ready(out)
    assert out.shape == (2, 10), out.shape
    assert bool(jnp.all(jnp.isfinite(out)))
    print("KERNEL_OK")
</pallas_src>

<mosaic_0001>
module attributes {stable_mosaic.version = 11 : i64} {
  func.func @_gemm_bn_act_kernel(%arg0: i32, %arg1: i32, %arg2: i32, %arg3: memref<256x128xbf16, #tpu.memory_space<vmem>>, %arg4: memref<128x128xbf16, #tpu.memory_space<vmem>>, %arg5: memref<1x128xf32, #tpu.memory_space<vmem>>, %arg6: memref<1x128xf32, #tpu.memory_space<vmem>>, %arg7: memref<256x128xbf16, #tpu.memory_space<vmem>>, %arg8: memref<256x128xf32, #tpu.memory_space<vmem>>) attributes {dimension_semantics = [#tpu.dimension_semantics<parallel>, #tpu.dimension_semantics<parallel>, #tpu.dimension_semantics<arbitrary>], iteration_bounds = array<i64: 2, 1, 2>, scalar_prefetch = 0 : i64, scratch_operands = 1 : i64, tpu.core_type = #tpu.core_type<tc>, window_params = [{transform_indices = @transform_0, window_bounds = array<i64: 256, 128>}, {transform_indices = @transform_1, window_bounds = array<i64: 128, 128>}, {transform_indices = @transform_2, window_bounds = array<i64: 1, 128>}, {transform_indices = @transform_3, window_bounds = array<i64: 1, 128>}, {transform_indices = @transform_4, window_bounds = array<i64: 256, 128>}]} {
    %c0_i32 = arith.constant 0 : i32
    %0 = arith.cmpi eq, %arg2, %c0_i32 : i32
    %1 = arith.extui %0 : i1 to i32
    %c0_i32_0 = arith.constant 0 : i32
    %2 = arith.cmpi ne, %1, %c0_i32_0 : i32
    scf.if %2 {
      %cst_9 = arith.constant 0.000000e+00 : f32
      %12 = vector.broadcast %cst_9 : f32 to vector<256x128xf32>
      %c0_10 = arith.constant 0 : index
      %c0_11 = arith.constant 0 : index
      %13 = vector.load %arg8[%c0_10, %c0_11] : memref<256x128xf32, #tpu.memory_space<vmem>>, vector<256x128xf32>
      tpu.vector_store %arg8[%c0_10, %c0_11], %12 {strides = array<i32>} : memref<256x128xf32, #tpu.memory_space<vmem>>, vector<256x128xf32>,
    } else {
    }
    %c0 = arith.constant 0 : index
    %c0_1 = arith.constant 0 : index
    %3 = vector.load %arg8[%c0, %c0_1] : memref<256x128xf32, #tpu.memory_space<vmem>>, vector<256x128xf32>
    %c0_2 = arith.constant 0 : index
    %c0_3 = arith.constant 0 : index
    %4 = vector.load %arg3[%c0_2, %c0_3] : memref<256x128xbf16, #tpu.memory_space<vmem>>, vector<256x128xbf16>
    %c0_4 = arith.constant 0 : index
    %c0_5 = arith.constant 0 : index
    %5 = vector.load %arg4[%c0_4, %c0_5] : memref<128x128xbf16, #tpu.memory_space<vmem>>, vector<128x128xbf16>
    %cst = arith.constant dense<0.000000e+00> : vector<256x128xf32>
    %6 = tpu.matmul %4, %5, %cst {dimension_numbers = #tpu.dot_dimension_numbers<[1], [0], [0], [1], [0, 0, 1, 1], [], []>} : vector<256x128xbf16>, vector<128x128xbf16>, vector<256x128xf32> -> vector<256x128xf32>
    %7 = arith.addf %3, %6 : vector<256x128xf32>
    %c0_6 = arith.constant 0 : index
    %c0_7 = arith.constant 0 : index
    %8 = vector.load %arg8[%c0_6, %c0_7] : memref<256x128xf32, #tpu.memory_space<vmem>>, vector<256x128xf32>
    tpu.vector_store %arg8[%c0_6, %c0_7], %7 {strides = array<i32>} : memref<256x128xf32, #tpu.memory_space<vmem>>, vector<256x128xf32>,
    %c1_i32 = arith.constant 1 : i32
    %9 = arith.cmpi eq, %arg2, %c1_i32 : i32
    %10 = arith.extui %9 : i1 to i32
    %c0_i32_8 = arith.constant 0 : i32
    %11 = arith.cmpi ne, %10, %c0_i32_8 : i32
    scf.if %11 {
      %c0_9 = arith.constant 0 : index
      %c0_10 = arith.constant 0 : index
      %12 = vector.load %arg8[%c0_9, %c0_10] : memref<256x128xf32, #tpu.memory_space<vmem>>, vector<256x128xf32>
      %c0_11 = arith.constant 0 : index
      %c0_12 = arith.constant 0 : index
      %13 = vector.load %arg5[%c0_11, %c0_12] : memref<1x128xf32, #tpu.memory_space<vmem>>, vector<1x128xf32>
      %14 = vector.broadcast %13 : vector<1x128xf32> to vector<256x128xf32>
      %15 = arith.mulf %12, %14 : vector<256x128xf32>
      %c0_13 = arith.constant 0 : index
      %c0_14 = arith.constant 0 : index
      %16 = vector.load %arg6[%c0_13, %c0_14] : memref<1x128xf32, #tpu.memory_space<vmem>>, vector<1x128xf32>
      %17 = vector.broadcast %16 : vector<1x128xf32> to vector<256x128xf32>
      %18 = arith.addf %15, %17 : vector<256x128xf32>
      %cst_15 = arith.constant 0.000000e+00 : f32
      %19 = vector.broadcast %cst_15 : f32 to vector<256x128xf32>
      %20 = arith.maximumf %18, %19 : vector<256x128xf32>
      %21 = arith.truncf %20 : vector<256x128xf32> to vector<256x128xbf16>
      %c0_16 = arith.constant 0 : index
      %c0_17 = arith.constant 0 : index
      %22 = vector.load %arg7[%c0_16, %c0_17] : memref<256x128xbf16, #tpu.memory_space<vmem>>, vector<256x128xbf16>
      tpu.vector_store %arg7[%c0_16, %c0_17], %21 {strides = array<i32>} : memref<256x128xbf16, #tpu.memory_space<vmem>>, vector<256x128xbf16>,
    } else {
    }
    return
  }
  func.func @transform_0(%arg0: i32, %arg1: i32, %arg2: i32) -> (i32, i32) {
    %c0_i32 = arith.constant 0 : i32
    return %arg0, %arg2 : i32, i32
  }
  func.func @transform_1(%arg0: i32, %arg1: i32, %arg2: i32) -> (i32, i32) {
    %c0_i32 = arith.constant 0 : i32
    return %arg2, %arg1 : i32, i32
  }
  func.func @transform_2(%arg0: i32, %arg1: i32, %arg2: i32) -> (i32, i32) {
    %c0_i32 = arith.constant 0 : i32
    %c0_i32_0 = arith.constant 0 : i32
    return %c0_i32, %arg1 : i32, i32
  }
  func.func @transform_3(%arg0: i32, %arg1: i32, %arg2: i32) -> (i32, i32) {
    %c0_i32 = arith.constant 0 : i32
    %c0_i32_0 = arith.constant 0 : i32
    return %c0_i32, %arg1 : i32, i32
  }
  func.func @transform_4(%arg0: i32, %arg1: i32, %arg2: i32) -> (i32, i32) {
    %c0_i32 = arith.constant 0 : i32
    return %arg0, %arg1 : i32, i32
  }
}

</mosaic_0001>

<bundles_post_ra>
// kernel: tpu_custom_call.1
= control target key start
LH: loop header
LB: loop body
LE: loop exit
PB: predicated region body
PF: predicated region fallthrough
CT: control target
= control target key end

     0   :  { %s2123_s0 = inlined_call_operand.hbm [shape: bf16[512,256], index: 0, kind: input, shape index: {}]   ;;  %s2124_s1 = inlined_call_operand.hbm [shape: bf16[256,128], index: 1, kind: input, shape index: {}]   ;;  %s2125_s2 = inlined_call_operand.vmem [shape: f32[1,128], index: 2, kind: input, shape index: {}]   ;;  %s2126_s3 = inlined_call_operand.vmem [shape: f32[1,128], index: 3, kind: input, shape index: {}]   ;;  %s2127_s4 = inlined_call_operand.hbm [shape: bf16[512,128], index: 4, kind: output, shape index: {}]  }
   0x1   :  { %2135 = sst [smem:[#allocation17_spill]] %s2123_s0 }
   0x2   :  { %2136 = sst [smem:[#allocation18_spill]] %s2124_s1 }
   0x3   :  { %2137 = sst [smem:[#allocation19_spill]] %s2125_s2 }
   0x4   :  { %2138 = sst [smem:[#allocation20_spill]] %s2126_s3 }
   0x5   :  { %2139 = sst [smem:[#allocation21_spill]] %s2127_s4 }
   0x6   :  { %9 = vsyncpa [#allocation4], 0 }
   0x7   :  { %11 = vsyncpa [#allocation4 + $0x1], 0 }
   0x8   :  { %12 = vsyncpa [#allocation7], 0 }
   0x9   :  { %14 = vsyncpa [#allocation7 + $0x1], 0 }
   0xa   :  { %15 = vsyncpa [#allocation5], 0 }
   0xb   :  { %17 = vsyncpa [#allocation5 + $0x1], 0  ;;  %s1741_s15 = smov 0   ;;  %s1743_s16 = smov 0  }
   0xc   :  { %s1745_s17 = smov 0   ;;  %s1747_s18 = smov 0  }
   0xd   :  { %s1749_s19 = smov 0   ;;  %s1751_s20 = smov 0  }
   0xe   :  { %s1753_s21 = smov 0   ;;  %s1755_s22 = smov 0  }
   0xf   :  { %s1757_s23 = smov 0   ;;  %s1759_s24 = smov 0  }
  0x10   :  { %s1761_s25 = smov 0   ;;  %s1763_s26 = smov 0  }
  0x11   :  { %s1765_s27 = smov 0   ;;  %s1767_s28 = smov 0  }
  0x12 LB: > { %2140 = sst [smem:[#allocation12_spill]] %s1692_s24  ;;  %s35_s29 = sadd.s32 1, %s1700_s26  ;;  %s1708_s28 = sphi %s1767_s28, %s23_s28   ;;  %s1704_s27 = sphi %s1765_s27, %s2166_s27   ;;  %s1700_s26 = sphi %s1763_s26, %s2177_s26   ;;  %s1696_s25 = sphi %s1761_s25, %s2164_s25   ;;  %s1692_s24 = sphi %s1759_s24, %s2176_s24   ;;  %s1688_s23 = sphi %s1757_s23, %s2175_s23   ;;  %s1684_s22 = sphi %s1755_s22, %s2174_s22   ;;  %s1680_s21 = sphi %s1753_s21, %s2173_s21   ;;  %s1676_s20 = sphi %s1751_s20, %s2172_s20   ;;  %s1672_s19 = sphi %s1749_s19, %s2171_s19   ;;  %s1668_s18 = sphi %s1747_s18, %s2170_s18   ;;  %s1664_s17 = sphi %s1745_s17, %s2169_s17   ;;  %s1660_s16 = sphi %s1743_s16, %s2168_s16   ;;  %s1656_s15 = sphi %s1741_s15, %s2167_s15  }
  0x13   : > { %2141 = sst [smem:[#allocation13_spill]] %s1696_s25  ;;  %s42_s30 = sadd.s32 1, %s1704_s27 }
  0x14   : > { %2142 = sst [smem:[#allocation14_spill]] %s1704_s27  ;;  %p36_p0 = scmp.ge.s32.totalorder %s35_s29, 2 }
  0x15   : > { %s51_s5 = sadd.s32 1, %s1688_s23  ;;  %p58_p1 = scmp.ne.s32.totalorder %s1688_s23, %s1684_s22 }
  0x16   : > { %p59_p2 = scmp.eq.s32.totalorder %s1708_s28, 0  ;;  %s2179_s29 = smov (%p36_p0, %s35_s29), 0 }
  0x17   : > { %2143 = sst [smem:[#allocation15_spill]] %s2179_s29  ;;  %s2181_s30 = smov (!%p36_p0, %s42_s30), %s1704_s27 }
  0x18   : > { %s1822_s6 = ssub.s32 %s1700_s26, %s2179_s29  ;;  %p1826_p3 = por %p59_p2, %p58_p1 }
  0x19   : > { %p44_p4 = scmp.ge.s32.totalorder %s2181_s30, 2  ;;  %p64_p5 = scmp.ne.s32.totalorder %s1684_s22, %s1680_s21 }
  0x1a   : > { %p77_p6 = scmp.eq.s32.totalorder %s1822_s6, 0  ;;  %s159_s8 = sadd.s32 1, %s1664_s17 }
  0x1b   : > { %s2183_s30 = smov (%p44_p4, %s2181_s30), 0  ;;  %p2131_p7 = scmp.lt.s32.totalorder %s1708_s28, 4 }
  0x1c   : > { %2145 = sst [smem:[#allocation16_spill]] %s2183_s30  ;;  %s46_s9 = ssub.s32 %s1704_s27, %s2183_s30 }
  0x1d   : > { %s208_s10 = sand.u32 1, %s1688_s23   ;;  %s48_s11 = sor.u32 %s1822_s6, %s46_s9 }
  0x1e   : > { %p157_p8 = scmp.eq.s32.totalorder %s46_s9, 0  ;;  %p49_p9 = scmp.eq.s32.totalorder %s48_s11, 0 }
  0x1f   : > { %s1099_s14 = sshll.u32 %s208_s10, 7  ;;  %s1213_s29 = sshll.u32 %s1704_s27, 6 }
  0x20   : > { %s1842_s12 = scalar_select %p157_p8, %s1664_s17, %s159_s8  }
  0x21   : > { %s1845_s13 = scalar_select %p49_p9, %s1688_s23, %s51_s5  }
  0x22   : > { %s217_s4 = sadd.s32 %s1700_s26, %s1213_s29  ;;  %s212_s3 = scalar_lea.vmem [#allocation3], %s1099_s14 }
  0x23   : > { %s1102_s25 = sshll.u32 %s217_s4, 2  ;;  %s222_s30 = sshll.u32 %s212_s3, 4  ;;  %s223_s30 = int_to_ptr.vmem [resolvable:$true] %s222_s30 }
  0x24   : > { %s2146_s0 = sld [smem:[#allocation17_spill]]  ;;  %p1366_p10 = pnand %p2131_p7, %p1826_p3 }
  0x25   : > { %p1106_p11 = scmp.ge.s32.totalorder %s1708_s28, 1  ;;  %s209_s2 = scalar_lea.sflag [#allocation4], %s208_s10 }
  0x26   : > { %s1710_s3 = smov 128   ;;  %s2132_s4 = smov 64  }
  0x27   : > { %s2133_s24 = smov 4   ;;  %p253_p12 = scmp.lt.s32.totalorder %s1708_s28, 5 }
  0x28   : > { %s1094_s29 = sadd.s32 4294967294, %s1708_s28   ;;  %s79_s5 = sadd.s32 1, %s1676_s20 }
  0x29   : > { %p1860_p13 = pnand %p1106_p11, %p253_p12  ;;  %p86_p3 = scmp.ne.s32.totalorder %s1676_s20, %s1672_s19 }
  0x2a   : > { %s219_s1 = scalar_lea.hbm %s2146_s0, %s1102_s25  ;;  %s1093_s25 = sadd.s32 4294967295, %s1708_s28  }
  0x2b   : > { %s220_s8 = sshll.u32 %s219_s1, 4  ;;  %p65_p0 = scmp.eq.s32.totalorder %s1093_s25, 0  ;;  %s221_s8 = int_to_ptr.hbm [resolvable:$true] %s220_s8 }
  0x2c   : > { %1368 = dma.hbm_to_vmem [thread:$0]  (!%p1366_p10), %s221_s8, 2048, %s223_s30, %s209_s2, %s1710_s3, %s2132_s4, %s2133_s24  }
  0x2d   : > { %s1870_s7 = scalar_select %p77_p6, %s1676_s20, %s79_s5  }
  0x2e   : > { %p1875_p1 = por %p65_p0, %p64_p5  ;;  %p92_p4 = scmp.ne.s32.totalorder %s1672_s19, %s1668_s18 }
  0x2f   : > { %p169_p8 = scmp.ne.s32.totalorder %s1664_s17, %s1660_s16  ;;  %p1887_p9 = por %p86_p3, %p59_p2 }
  0x30   : > { %p170_p10 = scmp.eq.s32.totalorder %s1093_s25, 3  ;;  %p1891_p11 = por %p92_p4, %p65_p0 }
  0x31   : > { %p175_p6 = scmp.ne.s32.totalorder %s1660_s16, %s1656_s15  ;;  %p176_p12 = scmp.eq.s32.totalorder %s1094_s29, 3 }
  0x32   : > { %p1897_p5 = por %p170_p10, %p169_p8  ;;  %s232_s18 = sand.u32 1, %s1676_s20  }
  0x33   : > { %s1214_s10 = sshll.u32 %s1700_s26, 6  ;;  %p1903_p7 = por %p176_p12, %p175_p6 }
  0x34   : > { %s1103_s14 = sshll.u32 %s232_s18, 6  ;;  %s2153_s3 = sld [smem:[#allocation18_spill]] }
  0x35   : > { %s236_s4 = scalar_lea.vmem [#allocation6], %s1103_s14  ;;  %p2154_p2 = scmp.lt.s32.totalorder %s1708_s28, 4 }
  0x36   : > { %s245_s24 = sshll.u32 %s236_s4, 4  ;;  %s233_s29 = scalar_lea.sflag [#allocation7], %s232_s18  ;;  %s246_s24 = int_to_ptr.vmem [resolvable:$true] %s245_s24 }
  0x37   : > { %p1369_p0 = pnand %p2154_p2, %p1887_p9  ;;  %s2155_s0 = smov 4  }
  0x38   : > { %s2156_s27 = smov 64   ;;  %257 = sbr.rel (%p1860_p13) target bundleno = 395 (0x18b), region = 36 }
  0x39   : > { %s259_s8 = sand.u32 (!%p1860_p13), 1, %s1684_s22  }
  0x3a   : > { %s242_s25 = scalar_lea.hbm %s2153_s3, %s1214_s10  ;;  %s1107_s10 = sshll.u32 (!%p1860_p13), %s259_s8, 7 }
  0x3b   : > { %s243_s5 = sshll.u32 %s242_s25, 4  ;;  %s260_s2 = scalar_lea.sflag (!%p1860_p13), [#allocation4], %s259_s8  ;;  %s244_s5 = int_to_ptr.hbm [resolvable:$true] %s243_s5 }
  0x3c   : > { %1371 = dma.hbm_to_vmem [thread:$0]  (!%p1369_p0), %s244_s5, 1024, %s246_s24, %s233_s29, %s2156_s27, %s2156_s27, %s2155_s0  }
  0x3d   : > { %s1920_s3 = scalar_lea.vmem [#allocation3], %s1107_s10 }
  0x3e   : > { %1643 = dma.done.wait (%p1875_p1), %s260_s2, 2048  }
  0x3f   : > { %1645 = vsyncadd (%p1875_p1), %s260_s2, 4294965248  ;;  %s269_s4 = sand.u32 1, %s1672_s19  }
  0x40   : > { %s1108_s30 = sshll.u32 %s269_s4, 6  ;;  %s270_s0 = scalar_lea.sflag [#allocation7], %s269_s4 }
  0x41   : > { %s1927_s27 = scalar_lea.vmem [#allocation6], %s1108_s30 }
  0x42   : > { %1647 = dma.done.wait (%p1891_p11), %s270_s0, 1024  }
  0x43   : > { %1649 = vsyncadd (%p1891_p11), %s270_s0, 4294966272  ;;  %s307_s24 = sand.u32 1, %s1660_s16   ;;  %s2157_s9 = sld [smem:[#allocation12_spill]] }
  0x44   : > { %s1109_s1 = sshll.u32 %s307_s24, 7 }
  0x45   : > { %s1936_s18 = scalar_lea.vmem [#allocation8], %s1109_s1 }
  0x49   : > { %p1110_p13 = scmp.ne.s32.totalorder %s2157_s9, 0 }
  0x4b   : > { %322 = sbr.rel (%p1110_p13) target bundleno = 113 (0x71), region = 48 }
  0x50   : > { %v1713_v0 = vmov 0.0  }
  0x51   : > { %323 = vst [vmem:[#allocation2 + $0xb0] sm:$0xff] %v1713_v0 }
  0x52   : > { %324 = vst [vmem:[#allocation2] sm:$0xff] %v1713_v0 }
  0x53   : > { %325 = vst [vmem:[#allocation2 + $0xd8] sm:$0xff] %v1713_v0 }
  0x54   : > { %326 = vst [vmem:[#allocation2 + $0x18] sm:$0xff] %v1713_v0 }
  0x55   : > { %327 = vst [vmem:[#allocation2 + $0x50] sm:$0xff] %v1713_v0 }
  0x56   : > { %328 = vst [vmem:[#allocation2 + $0x68] sm:$0xff] %v1713_v0 }
  0x57   : > { %329 = vst [vmem:[#allocation2 + $0x30] sm:$0xff] %v1713_v0 }
  0x58   : > { %330 = vst [vmem:[#allocation2 + $0x48] sm:$0xff] %v1713_v0 }
  0x59   : > { %331 = vst [vmem:[#allocation2 + $0x80] sm:$0xff] %v1713_v0 }
  0x5a   : > { %332 = vst [vmem:[#allocation2 + $0x88] sm:$0xff] %v1713_v0 }
  0x5b   : > { %333 = vst [vmem:[#allocation2 + $0xe8] sm:$0xff] %v1713_v0 }
  0x5c   : > { %334 = vst [vmem:[#allocation2 + $0xb8] sm:$0xff] %v1713_v0 }
  0x5d   : > { %335 = vst [vmem:[#allocation2 + $0x60] sm:$0xff] %v1713_v0 }
  0x5e   : > { %336 = vst [vmem:[#allocation2 + $0xf0] sm:$0xff] %v1713_v0 }
  0x5f   : > { %337 = vst [vmem:[#allocation2 + $0x8] sm:$0xff] %v1713_v0 }
  0x60   : > { %338 = vst [vmem:[#allocation2 + $0x78] sm:$0xff] %v1713_v0 }
  0x61   : > { %339 = vst [vmem:[#allocation2 + $0x38] sm:$0xff] %v1713_v0 }
  0x62   : > { %340 = vst [vmem:[#allocation2 + $0x58] sm:$0xff] %v1713_v0 }
  0x63   : > { %341 = vst [vmem:[#allocation2 + $0x40] sm:$0xff] %v1713_v0 }
  0x64   : > { %342 = vst [vmem:[#allocation2 + $0xc8] sm:$0xff] %v1713_v0 }
  0x65   : > { %343 = vst [vmem:[#allocation2 + $0xe0] sm:$0xff] %v1713_v0 }
  0x66   : > { %344 = vst [vmem:[#allocation2 + $0x90] sm:$0xff] %v1713_v0 }
  0x67   : > { %345 = vst [vmem:[#allocation2 + $0x70] sm:$0xff] %v1713_v0 }
  0x68   : > { %346 = vst [vmem:[#allocation2 + $0xc0] sm:$0xff] %v1713_v0 }
  0x69   : > { %347 = vst [vmem:[#allocation2 + $0xa8] sm:$0xff] %v1713_v0 }
  0x6a   : > { %348 = vst [vmem:[#allocation2 + $0xd0] sm:$0xff] %v1713_v0 }
  0x6b   : > { %349 = vst [vmem:[#allocation2 + $0x10] sm:$0xff] %v1713_v0 }
  0x6c   : > { %350 = vst [vmem:[#allocation2 + $0x28] sm:$0xff] %v1713_v0 }
  0x6d   : > { %351 = vst [vmem:[#allocation2 + $0xa0] sm:$0xff] %v1713_v0 }
  0x6e   : > { %352 = vst [vmem:[#allocation2 + $0xf8] sm:$0xff] %v1713_v0 }
  0x6f   : > { %353 = vst [vmem:[#allocation2 + $0x20] sm:$0xff] %v1713_v0 }
  0x70   : > { %354 = vst [vmem:[#allocation2 + $0x98] sm:$0xff] %v1713_v0 }
  0x71 PF: > { %v1238_v1 = vld [vmem:[%s1927_s27 + $0x38] sm:$0xff]  ;;  %v1237_v2 = vld [vmem:[%s1927_s27 + $0x30] sm:$0xff]  ;;  %v1236_v3 = vld [vmem:[%s1927_s27 + $0x28] sm:$0xff]  ;;  %s2158_s6 = sld [smem:[#allocation12_spill]] }
  0x72   : > { %579 = vmatpush.bf16.msra.mxu0 %v1238_v1  ;;  %1335 = vmatpush.bf16.msra.mxu1 %v1238_v1  ;;  %v1235_v4 = vld [vmem:[%s1927_s27 + $0x20] sm:$0xff]  ;;  %v1234_v5 = vld [vmem:[%s1927_s27 + $0x18] sm:$0xff]  ;;  %v1233_v6 = vld [vmem:[%s1927_s27 + $0x10] sm:$0xff] }
  0x73   : > { %1336 = vmatpush.bf16.msra.mxu2 %v1238_v1  ;;  %1337 = vmatpush.bf16.msra.mxu3 %v1238_v1  ;;  %v1232_v7 = vld [vmem:[%s1927_s27 + $0x8] sm:$0xff]  ;;  %v1231_v8 = vld [vmem:[%s1927_s27] sm:$0xff]  ;;  %v1217_v17 = vld [vmem:[%s1920_s3 + $0x10] sm:$0xff] }
  0x74   : > { %v1215_v9 = vld [vmem:[%s1920_s3] sm:$0xff]  ;;  %v1216_v13 = vld [vmem:[%s1920_s3 + $0x8] sm:$0xff]  ;;  %v1221_v18 = vld [vmem:[%s1920_s3 + $0x30] sm:$0xff] }
  0x75   : > { %v1219_v10 = vld [vmem:[%s1920_s3 + $0x20] sm:$0xff]  ;;  %v1220_v14 = vld [vmem:[%s1920_s3 + $0x28] sm:$0xff]  ;;  %v1225_v19 = vld [vmem:[%s1920_s3 + $0x50] sm:$0xff] }
  0x76   : > { %580 = vmatpush.bf16.msra.mxu0 %v1237_v2  ;;  %1338 = vmatpush.bf16.msra.mxu1 %v1237_v2  ;;  %v1223_v11 = vld [vmem:[%s1920_s3 + $0x40] sm:$0xff]  ;;  %v1224_v15 = vld [vmem:[%s1920_s3 + $0x48] sm:$0xff]  ;;  %v1229_v20 = vld [vmem:[%s1920_s3 + $0x70] sm:$0xff] }
  0x77   : > { %1339 = vmatpush.bf16.msra.mxu2 %v1237_v2  ;;  %1340 = vmatpush.bf16.msra.mxu3 %v1237_v2  ;;  %v1227_v12 = vld [vmem:[%s1920_s3 + $0x60] sm:$0xff]  ;;  %v1228_v16 = vld [vmem:[%s1920_s3 + $0x68] sm:$0xff]  ;;  %v1218_v21 = vld [vmem:[%s1920_s3 + $0x18] sm:$0xff]  ;;  %p1207_p1 = scmp.ne.s32.totalorder %s2158_s6, 1 }
  0x78   : > { %v1222_v22 = vld [vmem:[%s1920_s3 + $0x38] sm:$0xff]  ;;  %v355_v25 = vld [vmem:[#allocation2 + $0xb0] sm:$0xff]  ;;  %v363_v26 = vld [vmem:[#allocation2 + $0x80] sm:$0xff]  ;;  %s2159_s5 = sld [smem:[#allocation19_spill]] (!%p1207_p1) }
  0x79   : > { %v1226_v23 = vld [vmem:[%s1920_s3 + $0x58] sm:$0xff]  ;;  %v379_v32 = vld [vmem:[#allocation2 + $0xa8] sm:$0xff]  ;;  %v356_v33 = vld [vmem:[#allocation2] sm:$0xff]  ;;  %s2160_s10 = sld [smem:[#allocation20_spill]] (!%p1207_p1) }
  0x7a   : > { %581 = vmatpush.bf16.msra.mxu0 %v1236_v3  ;;  %1341 = vmatpush.bf16.msra.mxu1 %v1236_v3  ;;  %v1230_v24 = vld [vmem:[%s1920_s3 + $0x78] sm:$0xff]  ;;  %v364_v34 = vld [vmem:[#allocation2 + $0x88] sm:$0xff]  ;;  %v380_v44 = vld [vmem:[#allocation2 + $0xd0] sm:$0xff] }
  0x7b   : > { %1342 = vmatpush.bf16.msra.mxu2 %v1236_v3  ;;  %1343 = vmatpush.bf16.msra.mxu3 %v1236_v3  ;;  %v371_v31 = vld [vmem:[#allocation2 + $0x38] sm:$0xff]  ;;  %v365_v46 = vld [vmem:[#allocation2 + $0xe8] sm:$0xff]  ;;  %v373_v55 = vld [vmem:[#allocation2 + $0x40] sm:$0xff] }
  0x7c   : > { %v372_v43 = vld [vmem:[#allocation2 + $0x58] sm:$0xff]  ;;  %v381_v56 = vld [vmem:[#allocation2 + $0x10] sm:$0xff]  ;;  %v374_v3 = vld [vmem:[#allocation2 + $0xc8] sm:$0xff] }
  0x7d   : > { %v357_v45 = vld [vmem:[#allocation2 + $0xd8] sm:$0xff] }
  0x7e   : > { %582 = vmatpush.bf16.msra.mxu0 %v1235_v4  ;;  %1344 = vmatpush.bf16.msra.mxu1 %v1235_v4  ;;  %v358_v57 = vld [vmem:[#allocation2 + $0x18] sm:$0xff] }
  0x7f   : > { %1345 = vmatpush.bf16.msra.mxu2 %v1235_v4  ;;  %1346 = vmatpush.bf16.msra.mxu3 %v1235_v4  ;;  %v366_v58 = vld [vmem:[#allocation2 + $0xb8] sm:$0xff]  ;;  %v382_v4 = vld [vmem:[#allocation2 + $0x28] sm:$0xff] }
  0x82   : > { %583 = vmatpush.bf16.msra.mxu0 %v1234_v5  ;;  %1347 = vmatpush.bf16.msra.mxu1 %v1234_v5 }
  0x83   : > { %1348 = vmatpush.bf16.msra.mxu2 %v1234_v5  ;;  %1349 = vmatpush.bf16.msra.mxu3 %v1234_v5  ;;  %v359_v5 = vld [vmem:[#allocation2 + $0x50] sm:$0xff] }
  0x86   : > { %584 = vmatpush.bf16.msra.mxu0 %v1233_v6  ;;  %1350 = vmatpush.bf16.msra.mxu1 %v1233_v6 }
  0x87   : > { %1351 = vmatpush.bf16.msra.mxu2 %v1233_v6  ;;  %1352 = vmatpush.bf16.msra.mxu3 %v1233_v6  ;;  %v367_v6 = vld [vmem:[#allocation2 + $0x60] sm:$0xff] }
  0x8a   : > { %585 = vmatpush.bf16.msra.mxu0 %v1232_v7  ;;  %1353 = vmatpush.bf16.msra.mxu1 %v1232_v7 }
  0x8b   : > { %1354 = vmatpush.bf16.msra.mxu2 %v1232_v7  ;;  %1355 = vmatpush.bf16.msra.mxu3 %v1232_v7 }
  0x8e   : > { %586 = vmatpush.bf16.msra.mxu0 %v1231_v8  ;;  %1356 = vmatpush.bf16.msra.mxu1 %v1231_v8 }
  0x8f   : > { %1357 = vmatpush.bf16.msra.mxu2 %v1231_v8  ;;  %1358 = vmatpush.bf16.msra.mxu3 %v1231_v8 }
  0x91   : > { %587 = vmatmul.bf16.vlgmr.msra.gmra.mxu0 %v1215_v9  ;;  %607 = vmatmul.bf16.vlgmr.msra.gmra.mxu1 %v1219_v10 }
  0x92   : > { %627 = vmatmul.bf16.vlgmr.msra.gmra.mxu2 %v1223_v11  ;;  %647 = vmatmul.bf16.vlgmr.msra.gmra.mxu3 %v1227_v12 }
  0xa1   : > { %592 = vmatmul.bf16.gmra.mxu0 %v1216_v13  ;;  %612 = vmatmul.bf16.gmra.mxu1 %v1220_v14 }
  0xa2   : > { %632 = vmatmul.bf16.gmra.mxu2 %v1224_v15  ;;  %652 = vmatmul.bf16.gmra.mxu3 %v1228_v16  ;;  %v375_v15 = vld [vmem:[#allocation2 + $0xe0] sm:$0xff] }
  0xa3   : > { %v383_v16 = vld [vmem:[#allocation2 + $0xa0] sm:$0xff] }
  0xb1   : > { %597 = vmatmul.bf16.gmra.mxu0 %v1217_v17  ;;  %617 = vmatmul.bf16.gmra.mxu1 %v1221_v18  ;;  %v360_v17 = vld [vmem:[#allocation2 + $0x68] sm:$0xff]  ;;  %v368_v18 = vld [vmem:[#allocation2 + $0xf0] sm:$0xff] }
  0xb2   : > { %637 = vmatmul.bf16.gmra.mxu2 %v1225_v19  ;;  %657 = vmatmul.bf16.gmra.mxu3 %v1229_v20 }
  0xc1   : > { %602 = vmatmul.bf16.gmra.mxu0 %v1218_v21  ;;  %622 = vmatmul.bf16.gmra.mxu1 %v1222_v22 }
  0xc2   : > { %642 = vmatmul.bf16.gmra.mxu2 %v1226_v23  ;;  %662 = vmatmul.bf16.gmra.mxu3 %v1230_v24 }
 0x10e   : > { %v588_v27 = vpop.f32.mrf.mxu0  ;;  %v608_v28 = vpop.f32.mrf.mxu1 }
 0x10f   : > { %v668_v29 = vadd.f32 %v588_v27, %v355_v25  ;;  %v676_v30 = vadd.f32 %v608_v28, %v363_v26  ;;  %v376_v27 = vld [vmem:[#allocation2 + $0x90] sm:$0xff]  ;;  %v384_v28 = vld [vmem:[#allocation2 + $0xf8] sm:$0xff] }
 0x111   : > { %700 = vst [vmem:[#allocation2 + $0xb0] sm:$0xff] %v668_v29  ;;  %v361_v29 = vld [vmem:[#allocation2 + $0x30] sm:$0xff] }
 0x112   : > { %708 = vst [vmem:[#allocation2 + $0x80] sm:$0xff] %v676_v30  ;;  %v369_v30 = vld [vmem:[#allocation2 + $0x8] sm:$0xff] }
 0x115   : > { %v628_v35 = vpop.f32.mrf.mxu2  ;;  %v648_v36 = vpop.f32.mrf.mxu3 }
 0x116   : > { %v684_v37 = vadd.f32 %v628_v35, %v371_v31  ;;  %v692_v38 = vadd.f32 %v648_v36, %v379_v32  ;;  %v590_v39 = vpop.f32.mrf.mxu0  ;;  %v610_v40 = vpop.f32.mrf.mxu1 }
 0x117   : > { %v669_v41 = vadd.f32 %v590_v39, %v356_v33  ;;  %v677_v42 = vadd.f32 %v610_v40, %v364_v34  ;;  %v377_v39 = vld [vmem:[#allocation2 + $0x70] sm:$0xff]  ;;  %v385_v40 = vld [vmem:[#allocation2 + $0x20] sm:$0xff] }
 0x118   : > { %716 = vst [vmem:[#allocation2 + $0x38] sm:$0xff] %v684_v37 }
 0x119   : > { %724 = vst [vmem:[#allocation2 + $0xa8] sm:$0xff] %v692_v38 }
 0x11a   : > { %701 = vst [vmem:[#allocation2] sm:$0xff] %v669_v41  ;;  %v362_v41 = vld [vmem:[#allocation2 + $0x48] sm:$0xff] }
 0x11b   : > { %709 = vst [vmem:[#allocation2 + $0x88] sm:$0xff] %v677_v42  ;;  %v370_v42 = vld [vmem:[#allocation2 + $0x78] sm:$0xff] }
 0x11d   : > { %v630_v47 = vpop.f32.mrf.mxu2  ;;  %v650_v48 = vpop.f32.mrf.mxu3 }
 0x11e   : > { %v685_v49 = vadd.f32 %v630_v47, %v372_v43  ;;  %v693_v50 = vadd.f32 %v650_v48, %v380_v44  ;;  %v593_v51 = vpop.f32.mrf.mxu0  ;;  %v613_v52 = vpop.f32.mrf.mxu1 }
 0x11f   : > { %v670_v53 = vadd.f32 %v593_v51, %v357_v45  ;;  %v678_v54 = vadd.f32 %v613_v52, %v365_v46  ;;  %v378_v51 = vld [vmem:[#allocation2 + $0xc0] sm:$0xff]  ;;  %v386_v52 = vld [vmem:[#allocation2 + $0x98] sm:$0xff] }
 0x120   : > { %717 = vst [vmem:[#allocation2 + $0x58] sm:$0xff] %v685_v49 }
 0x121   : > { %725 = vst [vmem:[#allocation2 + $0xd0] sm:$0xff] %v693_v50 }
 0x122   : > { %702 = vst [vmem:[#allocation2 + $0xd8] sm:$0xff] %v670_v53 }
 0x123   : > { %710 = vst [vmem:[#allocation2 + $0xe8] sm:$0xff] %v678_v54 }
 0x125   : > { %v633_v59 = vpop.f32.mrf.mxu2  ;;  %v653_v60 = vpop.f32.mrf.mxu3 }
 0x126   : > { %v686_v61 = vadd.f32 %v633_v59, %v373_v55  ;;  %v694_v62 = vadd.f32 %v653_v60, %v381_v56  ;;  %v595_v63 = vpop.f32.mrf.mxu0  ;;  %v615_v0 = vpop.f32.mrf.mxu1 }
 0x127   : > { %v671_v1 = vadd.f32 %v595_v63, %v358_v57  ;;  %v679_v2 = vadd.f32 %v615_v0, %v366_v58 }
 0x128   : > { %718 = vst [vmem:[#allocation2 + $0x40] sm:$0xff] %v686_v61 }
 0x129   : > { %726 = vst [vmem:[#allocation2 + $0x10] sm:$0xff] %v694_v62 }
 0x12a   : > { %703 = vst [vmem:[#allocation2 + $0x18] sm:$0xff] %v671_v1 }
 0x12b   : > { %711 = vst [vmem:[#allocation2 + $0xb8] sm:$0xff] %v679_v2 }
 0x12d   : > { %v635_v7 = vpop.f32.mrf.mxu2  ;;  %v655_v8 = vpop.f32.mrf.mxu3 }
 0x12e   : > { %v687_v9 = vadd.f32 %v635_v7, %v374_v3  ;;  %v695_v10 = vadd.f32 %v655_v8, %v382_v4  ;;  %v598_v11 = vpop.f32.mrf.mxu0  ;;  %v618_v12 = vpop.f32.mrf.mxu1 }
 0x12f   : > { %v672_v13 = vadd.f32 %v598_v11, %v359_v5  ;;  %v680_v14 = vadd.f32 %v618_v12, %v367_v6 }
 0x130   : > { %719 = vst [vmem:[#allocation2 + $0xc8] sm:$0xff] %v687_v9 }
 0x131   : > { %727 = vst [vmem:[#allocation2 + $0x28] sm:$0xff] %v695_v10 }
 0x132   : > { %704 = vst [vmem:[#allocation2 + $0x50] sm:$0xff] %v672_v13 }
 0x133   : > { %712 = vst [vmem:[#allocation2 + $0x60] sm:$0xff] %v680_v14 }
 0x135   : > { %v638_v19 = vpop.f32.mrf.mxu2  ;;  %v658_v20 = vpop.f32.mrf.mxu3 }
 0x136   : > { %v688_v21 = vadd.f32 %v638_v19, %v375_v15  ;;  %v696_v22 = vadd.f32 %v658_v20, %v383_v16  ;;  %v600_v23 = vpop.f32.mrf.mxu0  ;;  %v620_v24 = vpop.f32.mrf.mxu1 }
 0x137   : > { %v673_v25 = vadd.f32 %v600_v23, %v360_v17  ;;  %v681_v26 = vadd.f32 %v620_v24, %v368_v18 }
 0x138   : > { %720 = vst [vmem:[#allocation2 + $0xe0] sm:$0xff] %v688_v21 }
 0x139   : > { %728 = vst [vmem:[#allocation2 + $0xa0] sm:$0xff] %v696_v22 }
 0x13a   : > { %705 = vst [vmem:[#allocation2 + $0x68] sm:$0xff] %v673_v25 }
 0x13b   : > { %713 = vst [vmem:[#allocation2 + $0xf0] sm:$0xff] %v681_v26 }
 0x13d   : > { %v640_v31 = vpop.f32.mrf.mxu2  ;;  %v660_v32 = vpop.f32.mrf.mxu3 }
 0x13e   : > { %v689_v33 = vadd.f32 %v640_v31, %v376_v27  ;;  %v697_v34 = vadd.f32 %v660_v32, %v384_v28  ;;  %v603_v35 = vpop.f32.mrf.mxu0  ;;  %v623_v36 = vpop.f32.mrf.mxu1 }
 0x13f   : > { %v674_v37 = vadd.f32 %v603_v35, %v361_v29  ;;  %v682_v38 = vadd.f32 %v623_v36, %v369_v30 }
 0x140   : > { %721 = vst [vmem:[#allocation2 + $0x90] sm:$0xff] %v689_v33 }
 0x141   : > { %729 = vst [vmem:[#allocation2 + $0xf8] sm:$0xff] %v697_v34 }
 0x142   : > { %706 = vst [vmem:[#allocation2 + $0x30] sm:$0xff] %v674_v37 }
 0x143   : > { %714 = vst [vmem:[#allocation2 + $0x8] sm:$0xff] %v682_v38 }
 0x145   : > { %v643_v43 = vpop.f32.mrf.mxu2  ;;  %v663_v44 = vpop.f32.mrf.mxu3 }
 0x146   : > { %v690_v45 = vadd.f32 %v643_v43, %v377_v39  ;;  %v698_v46 = vadd.f32 %v663_v44, %v385_v40  ;;  %v605_v47 = vpop.f32.mrf.mxu0  ;;  %v625_v48 = vpop.f32.mrf.mxu1 }
 0x147   : > { %v675_v49 = vadd.f32 %v605_v47, %v362_v41  ;;  %v683_v50 = vadd.f32 %v625_v48, %v370_v42 }
 0x148   : > { %722 = vst [vmem:[#allocation2 + $0x70] sm:$0xff] %v690_v45 }
 0x149   : > { %730 = vst [vmem:[#allocation2 + $0x20] sm:$0xff] %v698_v46 }
 0x14a   : > { %707 = vst [vmem:[#allocation2 + $0x48] sm:$0xff] %v675_v49 }
 0x14b   : > { %715 = vst [vmem:[#allocation2 + $0x78] sm:$0xff] %v683_v50 }
 0x14d   : > { %v645_v53 = vpop.f32.mrf.mxu2  ;;  %v665_v54 = vpop.f32.mrf.mxu3  ;;  %735 = sbr.rel (%p1207_p1) target bundleno = 373 (0x175), region = 52 }
 0x14e   : > { %v691_v55 = vadd.f32 %v645_v53, %v378_v51  ;;  %v699_v56 = vadd.f32 %v665_v54, %v386_v52 }
 0x150   : > { %723 = vst [vmem:[#allocation2 + $0xc0] sm:$0xff] %v691_v55 }
 0x151   : > { %731 = vst [vmem:[#allocation2 + $0x98] sm:$0xff] %v699_v56 }
 0x152   : > { %v736_v57 = vld [vmem:[#allocation2 + $0xb0] sm:$0xff]  ;;  %v737_v58 = vld [vmem:[#allocation2] sm:$0xff]  ;;  %v738_v61 = vld [vmem:[#allocation2 + $0xd8] sm:$0xff] }
 0x153   : > { %v1967_v59 = vld [vmem:[%s2159_s5] ss:$0 sm:$0xff]  ;;  %v739_v62 = vld [vmem:[#allocation2 + $0x18] sm:$0xff]  ;;  %v740_v63 = vld [vmem:[#allocation2 + $0x50] sm:$0xff] }
 0x154   : > { %v1972_v60 = vld [vmem:[%s2160_s10] ss:$0 sm:$0xff]  ;;  %v772_v0 = vmul.f32 %v1967_v59, %v736_v57  ;;  %v773_v1 = vmul.f32 %v1967_v59, %v737_v58  ;;  %v774_v2 = vmul.f32 %v1967_v59, %v738_v61  ;;  %v775_v3 = vmul.f32 %v1967_v59, %v739_v62  ;;  %v741_v4 = vld [vmem:[#allocation2 + $0x68] sm:$0xff]  ;;  %v742_v5 = vld [vmem:[#allocation2 + $0x30] sm:$0xff] }
 0x155   : > { %v743_v6 = vld [vmem:[#allocation2 + $0x48] sm:$0xff]  ;;  %v776_v7 = vmul.f32 %v1967_v59, %v740_v63  ;;  %v777_v8 = vmul.f32 %v1967_v59, %v741_v4  ;;  %v778_v9 = vmul.f32 %v1967_v59, %v742_v5  ;;  %v744_v19 = vld [vmem:[#allocation2 + $0x80] sm:$0xff]  ;;  %v747_v26 = vld [vmem:[#allocation2 + $0xb8] sm:$0xff] }
 0x156   : > { %v779_v10 = vmul.f32 %v1967_v59, %v743_v6  ;;  %v808_v11 = vadd.f32 %v1972_v60, %v772_v0  ;;  %v809_v12 = vadd.f32 %v1972_v60, %v773_v1  ;;  %v810_v13 = vadd.f32 %v1972_v60, %v774_v2  ;;  %v745_v20 = vld [vmem:[#allocation2 + $0x88] sm:$0xff]  ;;  %v748_v31 = vld [vmem:[#allocation2 + $0x60] sm:$0xff]  ;;  %v749_v32 = vld [vmem:[#allocation2 + $0xf0] sm:$0xff] }
 0x157   : > { %v811_v14 = vadd.f32 %v1972_v60, %v775_v3  ;;  %v812_v15 = vadd.f32 %v1972_v60, %v776_v7  ;;  %v813_v16 = vadd.f32 %v1972_v60, %v777_v8  ;;  %v814_v17 = vadd.f32 %v1972_v60, %v778_v9  ;;  %v746_v25 = vld [vmem:[#allocation2 + $0xe8] sm:$0xff]  ;;  %v751_v38 = vld [vmem:[#allocation2 + $0x78] sm:$0xff]  ;;  %v754_v63 = vld [vmem:[#allocation2 + $0x40] sm:$0xff] }
 0x158   : > { %v815_v18 = vadd.f32 %v1972_v60, %v779_v10  ;;  %v840_v21 = vmax.f32 %v808_v11, 0.0  ;;  %v841_v22 = vmax.f32 %v809_v12, 0.0  ;;  %v842_v23 = vmax.f32 %v810_v13, 0.0  ;;  %v750_v37 = vld [vmem:[#allocation2 + $0x8] sm:$0xff]  ;;  %v752_v51 = vld [vmem:[#allocation2 + $0x38] sm:$0xff]  ;;  %v756_v5 = vld [vmem:[#allocation2 + $0xe0] sm:$0xff] }
 0x159   : > { %v843_v24 = vmax.f32 %v811_v14, 0.0  ;;  %v844_v27 = vmax.f32 %v812_v15, 0.0  ;;  %v845_v28 = vmax.f32 %v813_v16, 0.0  ;;  %v846_v29 = vmax.f32 %v814_v17, 0.0  ;;  %v753_v56 = vld [vmem:[#allocation2 + $0x58] sm:$0xff]  ;;  %v755_v0 = vld [vmem:[#allocation2 + $0xc8] sm:$0xff] }
 0x15a   : > { %v847_v30 = vmax.f32 %v815_v18, 0.0  ;;  %v1243_v33 = vpack.c.bf16 %v841_v22, %v840_v21  ;;  %v780_v35 = vmul.f32 %v1967_v59, %v744_v19  ;;  %v781_v36 = vmul.f32 %v1967_v59, %v745_v20  ;;  %v757_v6 = vld [vmem:[#allocation2 + $0x90] sm:$0xff]  ;;  %v759_v16 = vld [vmem:[#allocation2 + $0xc0] sm:$0xff]  ;;  %v760_v21 = vld [vmem:[#allocation2 + $0xa8] sm:$0xff] }
 0x15b   : > { %v1248_v34 = vpack.c.bf16 %v843_v24, %v842_v23  ;;  %v1253_v39 = vpack.c.bf16 %v845_v28, %v844_v27  ;;  %v782_v41 = vmul.f32 %v1967_v59, %v746_v25  ;;  %v783_v42 = vmul.f32 %v1967_v59, %v747_v26  ;;  %v758_v11 = vld [vmem:[#allocation2 + $0x70] sm:$0xff] }
 0x15c   : > { %v1258_v40 = vpack.c.bf16 %v847_v30, %v846_v29  ;;  %1244 = vst [vmem:[%s1936_s18] sm:$0xff] %v1243_v33   ;;  %v816_v43 = vadd.f32 %v1972_v60, %v780_v35  ;;  %v817_v44 = vadd.f32 %v1972_v60, %v781_v36  ;;  %v784_v45 = vmul.f32 %v1967_v59, %v748_v31  ;;  %v761_v30 = vld [vmem:[#allocation2 + $0xd0] sm:$0xff]  ;;  %v763_v36 = vld [vmem:[#allocation2 + $0x28] sm:$0xff] }
 0x15d   : > { %v785_v46 = vmul.f32 %v1967_v59, %v749_v32  ;;  %1320 = vst [vmem:[%s1936_s18 + $0x8] sm:$0xff] %v1248_v34   ;;  %v818_v47 = vadd.f32 %v1972_v60, %v782_v41  ;;  %v819_v48 = vadd.f32 %v1972_v60, %v783_v42  ;;  %v786_v49 = vmul.f32 %v1967_v59, %v750_v37  ;;  %v762_v35 = vld [vmem:[#allocation2 + $0x10] sm:$0xff]  ;;  %v764_v41 = vld [vmem:[#allocation2 + $0xa0] sm:$0xff]  ;;  %v765_v42 = vld [vmem:[#allocation2 + $0xf8] sm:$0xff] }
 0x15e   : > { %v787_v50 = vmul.f32 %v1967_v59, %v751_v38  ;;  %1321 = vst [vmem:[%s1936_s18 + $0x10] sm:$0xff] %v1253_v39   ;;  %v848_v52 = vmax.f32 %v816_v43, 0.0  ;;  %v849_v53 = vmax.f32 %v817_v44, 0.0  ;;  %v820_v54 = vadd.f32 %v1972_v60, %v784_v45 }
 0x15f   : > { %v821_v55 = vadd.f32 %v1972_v60, %v785_v46  ;;  %1322 = vst [vmem:[%s1936_s18 + $0x18] sm:$0xff] %v1258_v40   ;;  %v850_v57 = vmax.f32 %v818_v47, 0.0  ;;  %v851_v58 = vmax.f32 %v819_v48, 0.0  ;;  %v822_v61 = vadd.f32 %v1972_v60, %v786_v49  ;;  %v766_v47 = vld [vmem:[#allocation2 + $0x20] sm:$0xff] }
 0x160   : > { %v823_v62 = vadd.f32 %v1972_v60, %v787_v50  ;;  %v1263_v1 = vpack.c.bf16 %v849_v53, %v848_v52  ;;  %v852_v2 = vmax.f32 %v820_v54, 0.0  ;;  %v788_v4 = vmul.f32 %v1967_v59, %v752_v51  ;;  %v767_v52 = vld [vmem:[#allocation2 + $0x98] sm:$0xff] }
 0x161   : > { %v853_v3 = vmax.f32 %v821_v55, 0.0  ;;  %v1268_v7 = vpack.c.bf16 %v851_v58, %v850_v57  ;;  %v854_v8 = vmax.f32 %v822_v61, 0.0  ;;  %v789_v10 = vmul.f32 %v1967_v59, %v753_v56 }
 0x162   : > { %v855_v9 = vmax.f32 %v823_v62, 0.0  ;;  %1323 = vst [vmem:[%s1936_s18 + $0x20] sm:$0xff] %v1263_v1   ;;  %v824_v13 = vadd.f32 %v1972_v60, %v788_v4  ;;  %v790_v14 = vmul.f32 %v1967_v59, %v754_v63  ;;  %v791_v15 = vmul.f32 %v1967_v59, %v755_v0 }
 0x163   : > { %v1273_v12 = vpack.c.bf16 %v853_v3, %v852_v2  ;;  %1324 = vst [vmem:[%s1936_s18 + $0x28] sm:$0xff] %v1268_v7   ;;  %v825_v18 = vadd.f32 %v1972_v60, %v789_v10  ;;  %v792_v19 = vmul.f32 %v1967_v59, %v756_v5  ;;  %v793_v20 = vmul.f32 %v1967_v59, %v757_v6 }
 0x164   : > { %v1278_v17 = vpack.c.bf16 %v855_v9, %v854_v8  ;;  %v856_v22 = vmax.f32 %v824_v13, 0.0  ;;  %v826_v23 = vadd.f32 %v1972_v60, %v790_v14  ;;  %v827_v24 = vadd.f32 %v1972_v60, %v791_v15 }
 0x165   : > { %1325 = vst [vmem:[%s1936_s18 + $0x30] sm:$0xff] %v1273_v12   ;;  %v794_v25 = vmul.f32 %v1967_v59, %v758_v11  ;;  %v857_v26 = vmax.f32 %v825_v18, 0.0  ;;  %v828_v27 = vadd.f32 %v1972_v60, %v792_v19  ;;  %v829_v28 = vadd.f32 %v1972_v60, %v793_v20 }
 0x166   : > { %1326 = vst [vmem:[%s1936_s18 + $0x38] sm:$0xff] %v1278_v17   ;;  %v795_v29 = vmul.f32 %v1967_v59, %v759_v16  ;;  %v858_v31 = vmax.f32 %v826_v23, 0.0  ;;  %v859_v32 = vmax.f32 %v827_v24, 0.0  ;;  %v796_v34 = vmul.f32 %v1967_v59, %v760_v21 }
 0x167   : > { %v830_v33 = vadd.f32 %v1972_v60, %v794_v25  ;;  %v1283_v37 = vpack.c.bf16 %v857_v26, %v856_v22  ;;  %v860_v38 = vmax.f32 %v828_v27, 0.0  ;;  %v861_v39 = vmax.f32 %v829_v28, 0.0 }
 0x168   : > { %v831_v40 = vadd.f32 %v1972_v60, %v795_v29  ;;  %v1288_v43 = vpack.c.bf16 %v859_v32, %v858_v31  ;;  %v797_v45 = vmul.f32 %v1967_v59, %v761_v30  ;;  %v832_v46 = vadd.f32 %v1972_v60, %v796_v34 }
 0x169   : > { %v862_v44 = vmax.f32 %v830_v33, 0.0  ;;  %1327 = vst [vmem:[%s1936_s18 + $0x40] sm:$0xff] %v1283_v37   ;;  %v1293_v48 = vpack.c.bf16 %v861_v39, %v860_v38  ;;  %v798_v50 = vmul.f32 %v1967_v59, %v762_v35  ;;  %v799_v51 = vmul.f32 %v1967_v59, %v763_v36 }
 0x16a   : > { %v863_v49 = vmax.f32 %v831_v40, 0.0  ;;  %1328 = vst [vmem:[%s1936_s18 + $0x48] sm:$0xff] %v1288_v43   ;;  %v833_v53 = vadd.f32 %v1972_v60, %v797_v45  ;;  %v864_v54 = vmax.f32 %v832_v46, 0.0  ;;  %v800_v55 = vmul.f32 %v1967_v59, %v764_v41 }
 0x16b   : > { %v801_v56 = vmul.f32 %v1967_v59, %v765_v42  ;;  %1329 = vst [vmem:[%s1936_s18 + $0x50] sm:$0xff] %v1293_v48   ;;  %v834_v58 = vadd.f32 %v1972_v60, %v798_v50  ;;  %v835_v61 = vadd.f32 %v1972_v60, %v799_v51  ;;  %v802_v62 = vmul.f32 %v1967_v59, %v766_v47 }
 0x16c   : > { %v1298_v57 = vpack.c.bf16 %v863_v49, %v862_v44  ;;  %v865_v63 = vmax.f32 %v833_v53, 0.0  ;;  %v836_v0 = vadd.f32 %v1972_v60, %v800_v55  ;;  %v803_v2 = vmul.f32 %v1967_v59, %v767_v52 }
 0x16d   : > { %v837_v1 = vadd.f32 %v1972_v60, %v801_v56  ;;  %v866_v3 = vmax.f32 %v834_v58, 0.0  ;;  %v867_v4 = vmax.f32 %v835_v61, 0.0  ;;  %v838_v5 = vadd.f32 %v1972_v60, %v802_v62 }
 0x16e   : > { %1330 = vst [vmem:[%s1936_s18 + $0x58] sm:$0xff] %v1298_v57   ;;  %v1303_v6 = vpack.c.bf16 %v865_v63, %v864_v54  ;;  %v868_v7 = vmax.f32 %v836_v0, 0.0  ;;  %v839_v9 = vadd.f32 %v1972_v60, %v803_v2 }
 0x16f   : > { %v869_v8 = vmax.f32 %v837_v1, 0.0  ;;  %v1308_v10 = vpack.c.bf16 %v867_v4, %v866_v3  ;;  %v870_v11 = vmax.f32 %v838_v5, 0.0 }
 0x170   : > { %1331 = vst [vmem:[%s1936_s18 + $0x60] sm:$0xff] %v1303_v6   ;;  %v871_v13 = vmax.f32 %v839_v9, 0.0 }
 0x171   : > { %v1313_v12 = vpack.c.bf16 %v869_v8, %v868_v7  ;;  %1332 = vst [vmem:[%s1936_s18 + $0x68] sm:$0xff] %v1308_v10  }
 0x172   : > { %v1318_v14 = vpack.c.bf16 %v871_v13, %v870_v11 }
 0x173   : > { %1333 = vst [vmem:[%s1936_s18 + $0x70] sm:$0xff] %v1313_v12  }
 0x174   : > { %1334 = vst [vmem:[%s1936_s18 + $0x78] sm:$0xff] %v1318_v14  }
 0x175 PF: > { %s2161_s2 = sld [smem:[#allocation13_spill]]  ;;  %s950_s1 = sshll.u32 %s1936_s18, 4  ;;  %s951_s1 = int_to_ptr.vmem [resolvable:$true] %s950_s1 }
 0x176   : > { %s2162_s0 = sld [smem:[#allocation21_spill]]  ;;  %s937_s6 = scalar_lea.sflag [#allocation5], %s307_s24 }
 0x17b   : > { %s1239_s3 = sshll.u32 %s2161_s2, 7 }
 0x17c   : > { %s949_s27 = scalar_lea.hbm %s2162_s0, %s1239_s3  ;;  %s1578_s8 = scalar_lea.hbm %s2162_s0, 256 }
 0x17d   : > { %s952_s9 = sshll.u32 %s949_s27, 4  ;;  %s953_s9 = int_to_ptr.hbm [resolvable:$true] %s952_s9 }
 0x17e   : > { %s1572_s14 = sshra.s32 %s953_s9, 4  ;;  %s1573_s14 = int_to_ptr.hbm [resolvable:$true] %s1572_s14 }
 0x17f   : > { %s1574_s25 = scalar_lea.hbm %s1573_s14, 128  ;;  %p1579_p9 = scmp.lt.s32.totalorder %s1573_s14, %s2162_s0 }
 0x180   : > { %p1575_p3 = scmp.ne.s32.totalorder %s1573_s14, %s1574_s25  ;;  %p1580_p10 = scmp.lt.s32.totalorder %s1578_s8, %s1574_s25 }
 0x182   : > { %p1576_p4 = pnand %p1575_p3, %p1897_p5  ;;  %p1581_p11 = por %p1580_p10, %p1579_p9 }
 0x184   : > { %p1577_p8 = pneg %p1576_p4 }
 0x186   : > { %p1582_p6 = pnand %p1581_p11, %p1577_p8 }
 0x188   : > { %1585 = shalt.err (!%p1582_p6)
}
 0x189   : > { %s1714_s24 = smov 64   ;;  %s1715_s18 = smov 4  }
 0x18a   : > { %1363 = dma.vmem_to_hbm [thread:$0]  (%p1897_p5), %s951_s1, 2048, %s953_s9, %s937_s6, %s1714_s24, %s1714_s24, %s1715_s18  }
 0x18b PF: > { %p1377_p12 = scmp.ge.s32.totalorder %s1708_s28, 2  ;;  %s967_s3 = sand.u32 1, %s1656_s15  }
 0x18c   : > { %s968_s4 = scalar_lea.sflag [#allocation5], %s967_s3 }
 0x18d   : > { %p1373_p2 = pnand %p1377_p12, %p1903_p7 }
 0x18f   : > { %p1374_p0 = pneg %p1373_p2 }
 0x191   : > { %1651 = dma.done.wait (%p1374_p0), %s968_s4, 2048  }
 0x192   : > { %1653 = vsyncadd (%p1374_p0), %s968_s4, 4294965248  ;;  %s23_s28 = sadd.s32 1, %s1708_s28   ;;  %s2164_s25 = sld [smem:[#allocation14_spill]] }
 0x193   : > { %p2076_p13 = scmp.ge.s32.totalorder %s23_s28, 6   ;;  %s2165_s11 = sld [smem:[#allocation15_spill]] }
 0x194   : > { %s2166_s27 = sld [smem:[#allocation16_spill]]  ;;  %s2167_s15 = smov %s1660_s16 }
 0x195   : > { %s2168_s16 = smov %s1664_s17  ;;  %s2169_s17 = smov %s1842_s12 }
 0x196   : > { %s2170_s18 = smov %s1672_s19  ;;  %s2171_s19 = smov %s1676_s20 }
 0x197   : > { %s2172_s20 = smov %s1870_s7  ;;  %s2173_s21 = smov %s1684_s22 }
 0x198   : > { %s2174_s22 = smov %s1688_s23  ;;  %s2175_s23 = smov %s1845_s13 }
 0x199   : > { %s2176_s24 = smov %s1700_s26  ;;  %s2177_s26 = smov %s2165_s11 }
 0x19a   :  { %22 = sbr.rel (!%p2076_p13) target bundleno = 18 (0x12), region = 108 }
 0x19f   :  { %974 = vsyncpa [#allocation4], 1 }
 0x1a0   :  { %976 = vsyncpa [#allocation4 + $0x1], 1 }
 0x1a1   :  { %977 = vsyncpa [#allocation7], 1 }
 0x1a2   :  { %979 = vsyncpa [#allocation7 + $0x1], 1 }
 0x1a3   :  { %980 = vsyncpa [#allocation5], 1 }
 0x1a4   :  { %982 = vsyncpa [#allocation5 + $0x1], 1 }

</bundles_post_ra>
